<compile_context>
chip_gen: v7x
topology: tpu7x:2x2x1
jax: 0.10.0
libtpu: 0.0.40
codegen_flags: <defaults>
</compile_context>

<pallas_src>
import functools

import jax
import jax.numpy as jnp
from jax.experimental import pallas as pl
from jax.experimental.pallas import tpu as pltpu


def _round_up(x, m):
    return ((x + m - 1) // m) * m


def _pick_tile(n):
    """Largest power-of-two tile (>=8) that divides n (n is a multiple of 8)."""
    for t in (512, 256, 128, 64, 32, 16, 8):
        if n % t == 0:
            return t
    return n


def _token_batch_tile(b_pad):
    tb = _pick_tile(b_pad)
    if b_pad >= 16:
        tb = min(tb, b_pad // 2)   # >= 2 grid steps: v7x megacore + pipeline overlap
    return min(tb, 256)


def _pool_batch_tile(b):
    """Batch tile for the streaming avg/max path: the full batch when tiny,
    otherwise a multiple of 8 giving >= 2 tiles where possible."""
    if b <= 8:
        return b                    # block == full dim -> no padding needed
    if b < 16:
        return 8
    return max(8, min(64, (b // 2) // 8 * 8))


def _pool_seq_tile(s, tb, d, itemsize, token_block_budget):
    """Largest sequence tile (multiple of 8, or the full sequence) such that the
    streamed [TB, TS, D] token block stays within the per-buffer VMEM budget."""
    if s <= 8 or tb * s * d * itemsize <= token_block_budget:
        return s
    ts = max(8, (token_block_budget // (tb * d * itemsize)) // 8 * 8)
    return min(ts, s)


def _vmem_limit_bytes(footprint):
    # At least the v5e scoped default; leave headroom below v7x's 64 MiB physical.
    return int(min(max(footprint + (4 << 20), 16 << 20), 56 << 20))


def _ln_linear(pooled_f32, gamma, beta, w, bias, eps):
    """Torch-style LayerNorm (biased var) + Linear.  Normalisation runs in f32; the
    matmul runs in the weight dtype on the MXU (bf16 weights -> single-pass bf16
    matmul), accumulating in f32."""
    mean = jnp.mean(pooled_f32, axis=-1, keepdims=True)
    centered = pooled_f32 - mean
    var = jnp.mean(centered * centered, axis=-1, keepdims=True)
    normed = centered * jax.lax.rsqrt(var + eps)
    normed = normed * gamma.astype(jnp.float32) + beta.astype(jnp.float32)
    out = jnp.dot(normed.astype(w.dtype), w, preferred_element_type=jnp.float32)
    return out + bias.astype(jnp.float32)


def _fine_token_head_kernel(eps, x_ref, gamma_ref, beta_ref, w_ref, bias_ref, o_ref):
    """Fused LayerNorm + Linear on a pre-pooled [TB, D] batch tile (cls tokens)."""
    pooled = x_ref[...].astype(jnp.float32)               # upcast only [TB, D]
    o_ref[...] = _ln_linear(pooled, gamma_ref[...], beta_ref[...],
                            w_ref[...], bias_ref[...], eps).astype(o_ref.dtype)


def _fine_pool_head_kernel(pooling, eps, S, TS,
                           tok_ref, gamma_ref, beta_ref, w_ref, bias_ref,
                           o_ref, acc_ref):
    """Running avg/max pooling over sequence tiles + fused LayerNorm + Linear.

    tok_ref : [TB, TS, D]  token tile (grid axis 1 walks the sequence)
    acc_ref : [TB, D] f32  running sum ('avg') / running max ('max')
    o_ref   : [TB, Cp]     written on the last sequence step only
    """
    j = pl.program_id(1)
    n_s = pl.num_programs(1)

    @pl.when(j == 0)
    def _():
        if pooling == "max":
            acc_ref[...] = jnp.full(acc_ref.shape, -jnp.inf, acc_ref.dtype)
        else:
            acc_ref[...] = jnp.zeros(acc_ref.shape, acc_ref.dtype)

    tok = tok_ref[...]                                     # stays in input dtype

    def accumulate(part):
        if pooling == "max":
            acc_ref[...] = jnp.maximum(acc_ref[...], part)
        else:
            acc_ref[...] = acc_ref[...] + part

    # Only edge tiles need per-position masking: tile 0 (drop the cls token) and a
    # ragged tail tile (drop sequence padding).  Interior tiles reduce the raw block
    # (no iota / compare / select work on the VPU).
    is_edge = j == 0
    if (S % TS) != 0:                                      # static: ragged tail exists
        is_edge = jnp.logical_or(is_edge, j == n_s - 1)

    @pl.when(is_edge)
    def _():
        pos = jax.lax.broadcasted_iota(jnp.int32, (1, TS, 1), 1) + j * TS
        valid = (pos >= 1) & (pos < S)
        if pooling == "max":
            part = jnp.max(jnp.where(valid, tok, -jnp.inf), axis=1).astype(jnp.float32)
        else:
            part = jnp.sum(jnp.where(valid, tok, 0), axis=1, dtype=jnp.float32)
        accumulate(part)

    @pl.when(jnp.logical_not(is_edge))
    def _():
        if pooling == "max":
            part = jnp.max(tok, axis=1).astype(jnp.float32)
        else:
            part = jnp.sum(tok, axis=1, dtype=jnp.float32)
        accumulate(part)

    @pl.when(j == n_s - 1)
    def _():
        pooled = acc_ref[...]
        if pooling == "avg":
            pooled = pooled * (1.0 / float(S - 1))
        o_ref[...] = _ln_linear(pooled, gamma_ref[...], beta_ref[...],
                                w_ref[...], bias_ref[...], eps).astype(o_ref.dtype)


def fine_forward(tokens, ln_gamma, ln_beta, w, b, *, pooling="token", eps=1e-5,
                 token_block_budget=4 << 20):
    """Post-encoder forward of `Fine`: pool tokens -> LayerNorm -> Linear.

    tokens: [B, S, D] encoder output (token 0 = cls); ln_gamma/ln_beta: [D];
    w: [D, C] (Linear weight transposed); b: [C].  Returns [B, C] f32 logits.
    """
    B, S, D = tokens.shape
    C = w.shape[1]
    out_dtype = jnp.float32
    if pooling in ("avg", "max") and S < 2:
        raise ValueError("avg/max pooling needs at least one non-cls token (S >= 2)")

    # Lane-dense output: pad n_class up to a multiple of 128 (unmasked vst),
    # slice the logits back afterwards.
    C_pad = _round_up(C, 128)
    w_p = jnp.pad(w, ((0, 0), (0, C_pad - C))) if C_pad != C else w
    b_p = (jnp.pad(b, (0, C_pad - C)) if C_pad != C else b).reshape(1, C_pad)
    g_p = ln_gamma.reshape(1, D)
    be_p = ln_beta.reshape(1, D)
    w_isz = w_p.dtype.itemsize

    if pooling == "token":
        # Only the cls row is touched in HBM (strided slice of B*D elements); the
        # kernel then streams [TB, D] batch tiles with the params resident.
        cls = tokens[:, 0, :]
        B_pad = _round_up(B, 8)
        if B_pad != B:
            cls = jnp.pad(cls, ((0, B_pad - B), (0, 0)))    # tiny: (B_pad-B)*D elems
        TB = _token_batch_tile(B_pad)
        footprint = (2 * TB * D * cls.dtype.itemsize        # cls tiles (double-buffered)
                     + 2 * D * C_pad * w_isz                # W
                     + 2 * (2 * D + C_pad) * 4              # gamma / beta / bias
                     + 2 * TB * C_pad * 4)                  # output
        out = pl.pallas_call(
            functools.partial(_fine_token_head_kernel, eps),
            out_shape=jax.ShapeDtypeStruct((B_pad, C_pad), out_dtype),
            grid=(B_pad // TB,),
            in_specs=[
                pl.BlockSpec((TB, D), lambda i: (i, 0)),        # cls tokens
                pl.BlockSpec((1, D), lambda i: (0, 0)),          # gamma (resident)
                pl.BlockSpec((1, D), lambda i: (0, 0)),          # beta  (resident)
                pl.BlockSpec((D, C_pad), lambda i: (0, 0)),      # W     (resident)
                pl.BlockSpec((1, C_pad), lambda i: (0, 0)),      # bias  (resident)
            ],
            out_specs=pl.BlockSpec((TB, C_pad), lambda i: (i, 0)),
            compiler_params=pltpu.CompilerParams(
                dimension_semantics=("parallel",),
                vmem_limit_bytes=_vmem_limit_bytes(footprint)),
        )(cls, g_p, be_p, w_p, b_p)
    else:  # 'avg' / 'max' — stream the token tensor once, no whole-tensor pad.
        TB = _pool_batch_tile(B)
        TS = _pool_seq_tile(S, TB, D, tokens.dtype.itemsize, token_block_budget)
        grid_b = pl.cdiv(B, TB)
        grid_s = pl.cdiv(S, TS)
        footprint = (2 * TB * TS * D * tokens.dtype.itemsize  # streamed token blocks
                     + 2 * D * C_pad * w_isz                  # W
                     + 2 * (2 * D + C_pad) * 4                # gamma / beta / bias
                     + 2 * TB * C_pad * 4                     # output
                     + TB * D * 4)                            # f32 accumulator
        out = pl.pallas_call(
            functools.partial(_fine_pool_head_kernel, pooling, eps, S, TS),
            out_shape=jax.ShapeDtypeStruct((B, C_pad), out_dtype),
            grid=(grid_b, grid_s),
            in_specs=[
                pl.BlockSpec((TB, TS, D), lambda i, j: (i, j, 0)),  # token tiles
                pl.BlockSpec((1, D), lambda i, j: (0, 0)),
                pl.BlockSpec((1, D), lambda i, j: (0, 0)),
                pl.BlockSpec((D, C_pad), lambda i, j: (0, 0)),
                pl.BlockSpec((1, C_pad), lambda i, j: (0, 0)),
            ],
            out_specs=pl.BlockSpec((TB, C_pad), lambda i, j: (i, 0)),
            scratch_shapes=[pltpu.VMEM((TB, D), jnp.float32)],
            compiler_params=pltpu.CompilerParams(
                dimension_semantics=("parallel", "arbitrary"),
                vmem_limit_bytes=_vmem_limit_bytes(footprint)),
        )(tokens, g_p, be_p, w_p, b_p)

    return out[:B, :C]


def _reference(tokens, ln_gamma, ln_beta, w, b, pooling="token", eps=1e-5):
    tok = tokens.astype(jnp.float32)
    if pooling == "avg":
        pooled = jnp.mean(tok[:, 1:, :], axis=1)
    elif pooling == "max":
        pooled = jnp.max(tok[:, 1:, :], axis=1)
    else:
        pooled = tok[:, 0, :]
    mean = jnp.mean(pooled, -1, keepdims=True)
    var = jnp.mean((pooled - mean) ** 2, -1, keepdims=True)
    normed = (pooled - mean) / jnp.sqrt(var + eps) * ln_gamma + ln_beta
    return normed @ w + b


if __name__ == "__main__":
    key = jax.random.PRNGKey(0)

    def make_case(k, B, S, D, C):
        k_tok, k_g, k_b, k_w, k_bias = jax.random.split(k, 5)
        tokens = jax.random.normal(k_tok, (B, S, D), dtype=jnp.float32)   # encoder output
        ln_gamma = 1.0 + 0.02 * jax.random.normal(k_g, (D,), dtype=jnp.float32)
        ln_beta = 0.02 * jax.random.normal(k_b, (D,), dtype=jnp.float32)
        w = jax.random.normal(k_w, (D, C), dtype=jnp.float32) / jnp.sqrt(D)  # Linear W.T
        bias = 0.01 * jax.random.normal(k_bias, (C,), dtype=jnp.float32)     # Linear bias
        return tokens, ln_gamma, ln_beta, w, bias

    k1, k2 = jax.random.split(key)
    cases = [
        # Small default-ish shape: B=2 samples, S=9 tokens (1 cls + 8 patches),
        # D=32, n_class=16; whole sequence fits in one block.
        (make_case(k1, 2, 9, 32, 16), 4 << 20),
        # Ragged batch (10 % 8 != 0) + tiled / ragged sequence (budget forces TS=32):
        # exercises interior (unmasked) and edge (masked) sequence tiles.
        (make_case(k2, 10, 100, 64, 15), 64 * 1024),
    ]

    for (tokens, g, be, w, bias), budget in cases:
        B, S, D = tokens.shape
        C = w.shape[1]
        for mode in ("token", "avg", "max"):
            out = fine_forward(tokens, g, be, w, bias, pooling=mode,
                               token_block_budget=budget)
            out = jax.block_until_ready(out)
            ref = _reference(tokens, g, be, w, bias, pooling=mode)
            assert out.shape == (B, C)
            assert jnp.allclose(out, ref, atol=5e-4, rtol=5e-4), (
                f"mismatch (mode={mode}, B={B}, S={S}, D={D}, C={C})")

    print("KERNEL_OK")
</pallas_src>

<mosaic_0001>
module attributes {stable_mosaic.version = 11 : i64} {
  func.func @_fine_token_head_kernel(%arg0: i32, %arg1: memref<8x32xf32, #tpu.memory_space<vmem>>, %arg2: memref<1x32xf32, #tpu.memory_space<vmem>>, %arg3: memref<1x32xf32, #tpu.memory_space<vmem>>, %arg4: memref<32x128xf32, #tpu.memory_space<vmem>>, %arg5: memref<1x128xf32, #tpu.memory_space<vmem>>, %arg6: memref<8x128xf32, #tpu.memory_space<vmem>>) attributes {dimension_semantics = [#tpu.dimension_semantics<parallel>], iteration_bounds = array<i64: 1>, scalar_prefetch = 0 : i64, scratch_operands = 0 : i64, tpu.core_type = #tpu.core_type<tc>, window_params = [{transform_indices = @transform_0, window_bounds = array<i64: 8, 32>}, {pipeline_mode = #tpu.pipeline_mode<synchronous>, transform_indices = @transform_1, window_bounds = array<i64: 1, 32>}, {pipeline_mode = #tpu.pipeline_mode<synchronous>, transform_indices = @transform_2, window_bounds = array<i64: 1, 32>}, {pipeline_mode = #tpu.pipeline_mode<synchronous>, transform_indices = @transform_3, window_bounds = array<i64: 32, 128>}, {pipeline_mode = #tpu.pipeline_mode<synchronous>, transform_indices = @transform_4, window_bounds = array<i64: 1, 128>}, {transform_indices = @transform_5, window_bounds = array<i64: 8, 128>}]} {
    %c0 = arith.constant 0 : index
    %c0_0 = arith.constant 0 : index
    %0 = vector.load %arg1[%c0, %c0_0] : memref<8x32xf32, #tpu.memory_space<vmem>>, vector<8x32xf32>
    %c0_1 = arith.constant 0 : index
    %c0_2 = arith.constant 0 : index
    %1 = vector.load %arg2[%c0_1, %c0_2] : memref<1x32xf32, #tpu.memory_space<vmem>>, vector<1x32xf32>
    %c0_3 = arith.constant 0 : index
    %c0_4 = arith.constant 0 : index
    %2 = vector.load %arg3[%c0_3, %c0_4] : memref<1x32xf32, #tpu.memory_space<vmem>>, vector<1x32xf32>
    %c0_5 = arith.constant 0 : index
    %c0_6 = arith.constant 0 : index
    %3 = vector.load %arg4[%c0_5, %c0_6] : memref<32x128xf32, #tpu.memory_space<vmem>>, vector<32x128xf32>
    %c0_7 = arith.constant 0 : index
    %c0_8 = arith.constant 0 : index
    %4 = vector.load %arg5[%c0_7, %c0_8] : memref<1x128xf32, #tpu.memory_space<vmem>>, vector<1x128xf32>
    %cst = arith.constant dense<0.000000e+00> : vector<8xf32>
    %5 = vector.multi_reduction <add>, %0, %cst [1] : vector<8x32xf32> to vector<8xf32>
    %6 = vector.shape_cast %5 : vector<8xf32> to vector<8x1xf32>
    %cst_9 = arith.constant 3.200000e+01 : f32
    %7 = vector.broadcast %cst_9 : f32 to vector<8x1xf32>
    %8 = arith.divf %6, %7 : vector<8x1xf32>
    %9 = vector.broadcast %8 : vector<8x1xf32> to vector<8x32xf32>
    %10 = arith.subf %0, %9 : vector<8x32xf32>
    %11 = arith.mulf %10, %10 : vector<8x32xf32>
    %cst_10 = arith.constant dense<0.000000e+00> : vector<8xf32>
    %12 = vector.multi_reduction <add>, %11, %cst_10 [1] : vector<8x32xf32> to vector<8xf32>
    %13 = vector.shape_cast %12 : vector<8xf32> to vector<8x1xf32>
    %cst_11 = arith.constant 3.200000e+01 : f32
    %14 = vector.broadcast %cst_11 : f32 to vector<8x1xf32>
    %15 = arith.divf %13, %14 : vector<8x1xf32>
    %cst_12 = arith.constant 9.99999974E-6 : f32
    %16 = vector.broadcast %cst_12 : f32 to vector<8x1xf32>
    %17 = arith.addf %15, %16 : vector<8x1xf32>
    %18 = math.rsqrt %17 : vector<8x1xf32>
    %19 = vector.broadcast %18 : vector<8x1xf32> to vector<8x32xf32>
    %20 = arith.mulf %10, %19 : vector<8x32xf32>
    %21 = vector.broadcast %1 : vector<1x32xf32> to vector<8x32xf32>
    %22 = arith.mulf %20, %21 : vector<8x32xf32>
    %23 = vector.broadcast %2 : vector<1x32xf32> to vector<8x32xf32>
    %24 = arith.addf %22, %23 : vector<8x32xf32>
    %cst_13 = arith.constant dense<0.000000e+00> : vector<8x128xf32>
    %25 = tpu.matmul %24, %3, %cst_13 {dimension_numbers = #tpu.dot_dimension_numbers<[1], [0], [0], [1], [0, 0, 1, 1], [], []>} : vector<8x32xf32>, vector<32x128xf32>, vector<8x128xf32> -> vector<8x128xf32>
    %26 = vector.broadcast %4 : vector<1x128xf32> to vector<8x128xf32>
    %27 = arith.addf %25, %26 : vector<8x128xf32>
    %c0_14 = arith.constant 0 : index
    %c0_15 = arith.constant 0 : index
    %28 = vector.load %arg6[%c0_14, %c0_15] : memref<8x128xf32, #tpu.memory_space<vmem>>, vector<8x128xf32>
    tpu.vector_store %arg6[%c0_14, %c0_15], %27 {strides = array<i32>} : memref<8x128xf32, #tpu.memory_space<vmem>>, vector<8x128xf32>,
    return
  }
  func.func @transform_0(%arg0: i32) -> (i32, i32) {
    %c0_i32 = arith.constant 0 : i32
    %c0_i32_0 = arith.constant 0 : i32
    return %arg0, %c0_i32 : i32, i32
  }
  func.func @transform_1(%arg0: i32) -> (i32, i32) {
    %c0_i32 = arith.constant 0 : i32
    %c0_i32_0 = arith.constant 0 : i32
    %c0_i32_1 = arith.constant 0 : i32
    return %c0_i32, %c0_i32_0 : i32, i32
  }
  func.func @transform_2(%arg0: i32) -> (i32, i32) {
    %c0_i32 = arith.constant 0 : i32
    %c0_i32_0 = arith.constant 0 : i32
    %c0_i32_1 = arith.constant 0 : i32
    return %c0_i32, %c0_i32_0 : i32, i32
  }
  func.func @transform_3(%arg0: i32) -> (i32, i32) {
    %c0_i32 = arith.constant 0 : i32
    %c0_i32_0 = arith.constant 0 : i32
    %c0_i32_1 = arith.constant 0 : i32
    return %c0_i32, %c0_i32_0 : i32, i32
  }
  func.func @transform_4(%arg0: i32) -> (i32, i32) {
    %c0_i32 = arith.constant 0 : i32
    %c0_i32_0 = arith.constant 0 : i32
    %c0_i32_1 = arith.constant 0 : i32
    return %c0_i32, %c0_i32_0 : i32, i32
  }
  func.func @transform_5(%arg0: i32) -> (i32, i32) {
    %c0_i32 = arith.constant 0 : i32
    %c0_i32_0 = arith.constant 0 : i32
    return %arg0, %c0_i32 : i32, i32
  }
}

</mosaic_0001>

<bundles_post_ra>
// kernel: tpu_custom_call.1
= control target key start
LH: loop header
LB: loop body
LE: loop exit
PB: predicated region body
PF: predicated region fallthrough
CT: control target
= control target key end

     0   :  { %10 = vsyncpa [#allocation3], 0  ;;  %s381_s0 = inlined_call_operand.hbm [shape: f32[8,32], index: 0, kind: input, shape index: {}]   ;;  %s382_s1 = inlined_call_operand.vmem [shape: f32[1,32], index: 1, kind: input, shape index: {}]   ;;  %s383_s2 = inlined_call_operand.vmem [shape: f32[1,32], index: 2, kind: input, shape index: {}]   ;;  %s384_s3 = inlined_call_operand.hbm [shape: f32[32,128], index: 3, kind: input, shape index: {}]   ;;  %s385_s4 = inlined_call_operand.vmem [shape: f32[1,128], index: 4, kind: input, shape index: {}]   ;;  %s386_s5 = inlined_call_operand.hbm [shape: f32[8,128], index: 5, kind: output, shape index: {}]  }
   0x1   :  { %11 = vsyncpa [#allocation6], 0 }
   0x2   :  { %12 = vsyncpa [#allocation4], 0  ;;  %s288_s18 = smov [#allocation2]   ;;  %s289_s20 = smov [#allocation5]  }
   0x3   :  { %s19_s19 = sshll.u32 %s288_s18, 4  ;;  %s32_s21 = sshll.u32 %s289_s20, 4  ;;  %s20_s19 = int_to_ptr.vmem [resolvable:$true] %s19_s19  ;;  %s326_s21 = int_to_ptr.vmem [resolvable:$true] %s32_s21 }
   0x4   :  { %s216_s24 = scalar_lea.hbm %s381_s0, 128 }
   0x5   :  { %p217_p0 = scmp.ne.s32.totalorder %s381_s0, %s216_s24  ;;  %p220_p1 = scmp.lt.u32.totalorder %s216_s24, %s381_s0 }
   0x7   :  { %p222_p2 = pnand %p220_p1, %p217_p0 }
   0x9   :  { %225 = shalt.err (!%p222_p2)
}
   0xa   :  { %s226_s29 = scalar_lea.vmem %s20_s19, 128  ;;  %p231_p4 = scmp.lt.s32.totalorder %s20_s19, %s20_s19 }
   0xb   :  { %p227_p3 = scmp.ne.s32.totalorder %s20_s19, %s226_s29  ;;  %p232_p5 = scmp.lt.s32.totalorder %s226_s29, %s226_s29 }
   0xd   :  { %p233_p6 = por %p232_p5, %p231_p4 }
   0xf   :  { %p234_p7 = pnand %p233_p6, %p227_p3 }
  0x11   :  { %237 = shalt.err (!%p234_p7)
}
  0x12   :  { %22 = dma.hbm_to_vmem [thread:$0]  %s381_s0, 128, %s20_s19, [#allocation3]  }
  0x13   :  { %s238_s9 = scalar_lea.hbm %s384_s3, 512 }
  0x14   :  { %p239_p8 = scmp.ne.s32.totalorder %s384_s3, %s238_s9  ;;  %p242_p9 = scmp.lt.u32.totalorder %s238_s9, %s384_s3 }
  0x16   :  { %p244_p10 = pnand %p242_p9, %p239_p8 }
  0x18   :  { %247 = shalt.err (!%p244_p10)
}
  0x19   :  { %s248_s14 = scalar_lea.vmem %s326_s21, 512  ;;  %p253_p12 = scmp.lt.s32.totalorder %s326_s21, %s326_s21 }
  0x1a   :  { %p249_p11 = scmp.ne.s32.totalorder %s326_s21, %s248_s14  ;;  %p254_p13 = scmp.lt.s32.totalorder %s248_s14, %s248_s14 }
  0x1c   :  { %p255_p0 = por %p254_p13, %p253_p12 }
  0x1e   :  { %p256_p1 = pnand %p255_p0, %p249_p11 }
  0x20   :  { %259 = shalt.err (!%p256_p1)
}
  0x21   :  { %s290_s0 = smov 128   ;;  %s291_s15 = smov 8  }
  0x22   :  { %38 = dma.hbm_to_vmem [thread:$0]  %s384_s3, 512, %s326_s21, [#allocation6], %s290_s0, %s290_s0, %s291_s15  }
  0x23   :  { %282 = dma.done.wait [#allocation3], 128  }
  0x24   :  { %283 = vsyncadd [#allocation3], 4294967168 }
  0x25   :  { %284 = dma.done.wait [#allocation6], 512  }
  0x26   :  { %285 = vsyncadd [#allocation6], 4294966784  ;;  %vm55_vm0 = vcmask 261120   ;;  %v47_v0 = vld [vmem:[#allocation2] sm:$0xff]  ;;  %v50_v7 = vld [vmem:[#allocation5] sm:$0xff]  ;;  %v292_v10 = vmov 0.0|0.0  }
  0x27   :  { %v56_v1 = vsel %vm55_vm0, %v47_v0, 0.0  ;;  %v51_v8 = vld [vmem:[#allocation5 + $0x8] sm:$0xff]  ;;  %v52_v9 = vld [vmem:[#allocation5 + $0x10] sm:$0xff]  ;;  %200 = vmatprep.subr.bf16.mxu0 %v292_v10  ;;  %v53_v12 = vld [vmem:[#allocation5 + $0x18] sm:$0xff]  ;;  %vm293_vm1 = vmmov 0   ;;  %v294_v13 = vmov 0.0  }
  0x28   :  { %57 = vadd.xlane.f32.xlu0 %v56_v1  ;;  %v201_v11 = vpack.c.bf16 %v51_v8, %v50_v7  ;;  %197 = vmatprep.mubr.msk.f32.mxu0 %vm293_vm1, %v294_v13  ;;  %v204_v14 = vpack.c.bf16 %v53_v12, %v52_v9  ;;  %v180_v19 = vld [vmem:[%s382_s1] ss:$0 sm:$0xff]  ;;  %s295_s23 = smov [#allocation7]  }
  0x29   :  { %v181_v21 = vld [vmem:[%s383_s2] ss:$0 sm:$0xff]  ;;  %s170_s24 = sshll.u32 %s295_s23, 4  ;;  %s171_s24 = int_to_ptr.vmem [resolvable:$true] %s170_s24 }
  0x2a   :  { %202 = vmatpush3.bf16.msra.mxu0 %v201_v11  ;;  %v182_v24 = vld [vmem:[%s385_s4] ss:$0 sm:$0xff]  ;;  %s260_s1 = scalar_lea.vmem %s171_s24, 128  ;;  %p265_p3 = scmp.lt.s32.totalorder %s171_s24, %s171_s24 }
  0x2b   :  { %203 = vmatprep.subr.bf16.mxu0 %v292_v10  ;;  %p261_p2 = scmp.ne.s32.totalorder %s171_s24, %s260_s1  ;;  %p266_p4 = scmp.lt.s32.totalorder %s260_s1, %s260_s1 }
  0x2d   :  { %p267_p5 = por %p266_p4, %p265_p3 }
  0x2e   :  { %205 = vmatpush3.bf16.msra.mxu0 %v204_v14 }
  0x2f   :  { %p268_p6 = pnand %p267_p5, %p261_p2 }
  0xb5   :  { %v58_v2 = vpop.xlane.xlu0 %57 }
  0xb6   :  { %v60_v3 = vmul.f32 0.03125, %v58_v2 }
  0xb8   :  { %v61_v4 = vsub.f32 %v47_v0, %v60_v3 }
  0xba   :  { %v62_v5 = vmul.f32 %v61_v4, %v61_v4 }
  0xbc   :  { %v63_v6 = vsel %vm55_vm0, %v62_v5, 0.0 }
  0xbd   :  { %64 = vadd.xlane.f32.xlu0 %v63_v6 }
 0x14a   :  { %v65_v15 = vpop.xlane.xlu0 %64 }
 0x14b   :  { %v66_v16 = vmul.f32 0.03125, %v65_v15 }
 0x14d   :  { %v67_v17 = vadd.f32 1e-05, %v66_v16 }
 0x14f   :  { %214 = vrsqrt.f32 %v67_v17 }
 0x159   :  { %v215_v18 = vpop.eup %214 }
 0x15a   :  { %v69_v20 = vmul.f32 %v215_v18, %v61_v4 }
 0x15c   :  { %v76_v22 = vmul.f32 %v180_v19, %v69_v20 }
 0x15e   :  { %v83_v23 = vadd.f32 %v181_v21, %v76_v22 }
 0x160   :  { %198 = vmatmul.mubr.msk.f32.vlgmr.msra.gmra.mrb[0].mxu0 %vm55_vm0, %v83_v23 }
 0x233   :  { %v159_v25 = vpop.f32.mrb[0].mxu0 }
 0x234   :  { %v160_v26 = vadd.f32 %v182_v24, %v159_v25  ;;  %v199_v27 = vpop.f32.mrb[1].mxu0 }
 0x236   :  { %163 = vst [vmem:[#allocation7] sm:$0xff] %v160_v26 }
 0x237   :  { %271 = shalt.err (!%p268_p6)
}
 0x238   :  { %s272_s26 = scalar_lea.hbm %s386_s5, 128 }
 0x239   :  { %p273_p7 = scmp.ne.s32.totalorder %s386_s5, %s272_s26  ;;  %p276_p8 = scmp.lt.u32.totalorder %s272_s26, %s386_s5 }
 0x23b   :  { %p278_p9 = pnand %p276_p8, %p273_p7 }
 0x23d   :  { %281 = shalt.err (!%p278_p9)
}
 0x23e   :  { %173 = dma.vmem_to_hbm [thread:$0]  %s171_s24, 128, %s386_s5, [#allocation4]  }
 0x23f   :  { %286 = dma.done.wait [#allocation4], 128  }
 0x240   :  { %287 = vsyncadd [#allocation4], 4294967168 }
 0x241   :  { %177 = vsyncpa [#allocation3], 1 }
 0x242   :  { %178 = vsyncpa [#allocation6], 1 }
 0x243   :  { %179 = vsyncpa [#allocation4], 1 }

</bundles_post_ra>
